<compile_context>
chip_gen: v7x
topology: tpu7x:2x2x1
jax: 0.10.0
libtpu: 0.0.40
codegen_flags: <defaults>
</compile_context>

<pallas_src>
import jax
import jax.numpy as jnp
import numpy as np
from jax.experimental import pallas as pl
from jax.experimental.pallas import tpu as pltpu

# ----------------------------- model config ---------------------------------
DIM_IN = 16
DIM_OUT = 4
N_COMPONENTS = 5
HIDDEN = 32                      # 4 heads * 32 = 128 lanes -> exact vreg width
Z_DIM = 3
BATCH = 8
TB = 8                           # batch tile (sublane-aligned)

LANES = 128
N_MEAN = DIM_OUT * N_COMPONENTS  # 20
N_STD = DIM_OUT * N_COMPONENTS   # 20
N_WGT = N_COMPONENTS             # 5
N_CLS = 1
OUT_OFF = [0, N_MEAN, N_MEAN + N_STD, N_MEAN + N_STD + N_WGT]   # 0, 20, 40, 45
OUT_DIM = [N_MEAN, N_STD, N_WGT, N_CLS]

# W_slab row layout (all offsets are multiples of 8 -> clean sublane slices)
R_BASE = [0, 128, 256, 384]      # base trunk layers 0..3 (each 128 rows, zero-padded)
R_WH = 512                       # fused head layer-1, h part   (128 rows)
R_WZ = 640                       # fused z / z_ projection      (8 rows)
R_W1 = 648                       # fused head layer-2 (block-diag, 128 rows)
R_W2 = 776                       # fused head layer-3 (128 rows)
W_ROWS = 904
B_ROWS = 8                       # bias slab rows: 4 base + 3 head + 1 pad


# ----------------------------- in-kernel math --------------------------------
def _elu(v):
    # ELU(alpha=1): v if v > 0 else exp(v) - 1
    return jnp.where(v > 0.0, v, jnp.exp(jnp.minimum(v, 0.0)) - 1.0)


def _softplus(v):
    # numerically stable log(1 + exp(v))  (matches jax.nn.softplus)
    return jnp.maximum(v, 0.0) + jnp.log1p(jnp.exp(-jnp.abs(v)))


def _dot(a, b):
    return jnp.dot(a, b, preferred_element_type=jnp.float32)


def mdn_kernel(x_ref, zc_ref, w_ref, b_ref, out_ref):
    x = x_ref[...]        # [TB, 128]  (x in lanes 0:16, rest zero)
    zc = zc_ref[...]      # [TB, 8]    ([z_ | z | 0])

    # ----- base trunk: Linear+ELU x3, Linear+Tanh (128-lane padded) -----
    h = _elu(_dot(x, w_ref[R_BASE[0]:R_BASE[0] + 128, :]) + b_ref[0:1, :])
    h = _elu(_dot(h, w_ref[R_BASE[1]:R_BASE[1] + 128, :]) + b_ref[1:2, :])
    h = _elu(_dot(h, w_ref[R_BASE[2]:R_BASE[2] + 128, :]) + b_ref[2:3, :])
    h = jnp.tanh(_dot(h, w_ref[R_BASE[3]:R_BASE[3] + 128, :]) + b_ref[3:4, :])

    # ----- all 4 heads fused into 3 lane-dense matmuls (+ one tiny z matmul) -----
    a = _elu(_dot(h, w_ref[R_WH:R_WH + 128, :])
             + _dot(zc, w_ref[R_WZ:R_WZ + 8, :])
             + b_ref[4:5, :])
    a = _elu(_dot(a, w_ref[R_W1:R_W1 + 128, :]) + b_ref[5:6, :])
    raw = _dot(a, w_ref[R_W2:R_W2 + 128, :]) + b_ref[6:7, :]

    # Per-column output activations over the packed slab:
    #   cols [0,20)  -> tanh (means)
    #   cols [20,40) -> clamp(softplus, 1e-5) (stds)
    #   cols [40,46) -> identity (mixture weights, classifier logit)
    col = jax.lax.broadcasted_iota(jnp.int32, raw.shape, 1)
    out = jnp.where(col < N_MEAN, jnp.tanh(raw),
                    jnp.where(col < N_MEAN + N_STD,
                              jnp.maximum(_softplus(raw), 1e-5),
                              raw))
    out_ref[...] = out


# ------------------------------ wrapper --------------------------------------
@jax.jit
def mdn_forward(w_slab, b_slab, x, z, z_):
    batch = x.shape[0]
    bp = ((batch + TB - 1) // TB) * TB

    # Lane-dense padded inputs (done once per call; cheap XLA ops).
    x_pad = jnp.zeros((bp, LANES), jnp.float32).at[:batch, :DIM_IN].set(x)
    zcat = (jnp.zeros((bp, 8), jnp.float32)
            .at[:batch, 0:Z_DIM].set(z_)        # z_ feeds mean / std / weight heads
            .at[:batch, Z_DIM:2 * Z_DIM].set(z))  # z feeds classifier head

    flops = 2 * bp * LANES * (7 * 128 + 8)
    transcendentals = 9 * bp * LANES
    bytes_accessed = 4 * (W_ROWS * LANES + B_ROWS * LANES
                          + bp * LANES + bp * 8 + bp * LANES)

    out = pl.pallas_call(
        mdn_kernel,
        out_shape=jax.ShapeDtypeStruct((bp, LANES), jnp.float32),
        grid_spec=pltpu.PrefetchScalarGridSpec(
            num_scalar_prefetch=0,
            grid=(bp // TB,),
            in_specs=[
                pl.BlockSpec((TB, LANES), lambda i: (i, 0)),     # x (streamed)
                pl.BlockSpec((TB, 8), lambda i: (i, 0)),         # zcat (streamed)
                pl.BlockSpec((W_ROWS, LANES), lambda i: (0, 0)),  # weights (resident)
                pl.BlockSpec((B_ROWS, LANES), lambda i: (0, 0)),  # biases  (resident)
            ],
            out_specs=pl.BlockSpec((TB, LANES), lambda i: (i, 0)),
        ),
        compiler_params=pltpu.CompilerParams(
            dimension_semantics=("parallel",)),
        cost_estimate=pl.CostEstimate(flops=flops,
                                      transcendentals=transcendentals,
                                      bytes_accessed=bytes_accessed),
    )(x_pad, zcat, w_slab, b_slab)

    means = out[:batch, OUT_OFF[0]:OUT_OFF[0] + N_MEAN]
    stds = out[:batch, OUT_OFF[1]:OUT_OFF[1] + N_STD]
    weights = out[:batch, OUT_OFF[2]:OUT_OFF[2] + N_WGT]
    logits = out[:batch, OUT_OFF[3]:OUT_OFF[3] + N_CLS]
    return means, stds, weights, logits


# --------------------------- parameter init ----------------------------------
def _init_linear(key, fan_in, fan_out):
    k1, k2 = jax.random.split(key)
    bound = 1.0 / np.sqrt(fan_in)
    W = jax.random.uniform(k1, (fan_in, fan_out), jnp.float32, -bound, bound)
    b = jax.random.uniform(k2, (1, fan_out), jnp.float32, -bound, bound)
    return W, b


def init_params(key):
    """Per-layer params (W stored [in,out]); head layer-1 split into (Wh, Wz)."""
    keys = jax.random.split(key, 16)
    ki = iter(keys)
    flat = []
    for fi, fo in [(DIM_IN, HIDDEN), (HIDDEN, HIDDEN), (HIDDEN, HIDDEN), (HIDDEN, HIDDEN)]:
        W, b = _init_linear(next(ki), fi, fo)
        flat += [W, b]

    def head_params(k, out_dim):
        k0, k1, k2 = jax.random.split(k, 3)
        W0, b0 = _init_linear(k0, HIDDEN + Z_DIM, HIDDEN)
        W1, b1 = _init_linear(k1, HIDDEN, HIDDEN)
        W2, b2 = _init_linear(k2, HIDDEN, out_dim)
        return [W0[:HIDDEN, :], W0[HIDDEN:, :], b0, W1, b1, W2, b2]

    flat += head_params(next(ki), N_MEAN)     # mean head
    flat += head_params(next(ki), N_STD)      # std head
    flat += head_params(next(ki), N_WGT)      # weight head
    flat += head_params(next(ki), N_CLS)      # classifier head
    return flat


def pack_params(flat_params):
    """Pack all 36 parameter tensors into two lane-dense (8,128)-aligned slabs."""
    p = [np.asarray(t, np.float32) for t in flat_params]
    base = p[0:8]
    heads = [p[8 + 7 * i: 8 + 7 * (i + 1)] for i in range(4)]  # Wh,Wz,b0,W1,b1,W2,b2

    W = np.zeros((W_ROWS, LANES), np.float32)
    B = np.zeros((B_ROWS, LANES), np.float32)

    # Base trunk: each layer zero-padded to [128, 128].
    dims_in = [DIM_IN, HIDDEN, HIDDEN, HIDDEN]
    for li in range(4):
        Wl, bl = base[2 * li], base[2 * li + 1]
        r0 = R_BASE[li]
        W[r0:r0 + dims_in[li], 0:HIDDEN] = Wl
        B[li, 0:HIDDEN] = bl[0]

    for hi, (Wh, Wz, b0, W1, b1, W2, b2) in enumerate(heads):
        c0 = HIDDEN * hi
        # fused head layer 1: h part (only the first HIDDEN rows are non-zero)
        W[R_WH:R_WH + HIDDEN, c0:c0 + HIDDEN] = Wh
        B[4, c0:c0 + HIDDEN] = b0[0]
        # fused z projection: heads 0-2 read z_ (rows 0:3), classifier reads z (rows 3:6)
        zr = R_WZ + (0 if hi < 3 else Z_DIM)
        W[zr:zr + Z_DIM, c0:c0 + HIDDEN] = Wz
        # fused head layer 2: block-diagonal
        W[R_W1 + c0:R_W1 + c0 + HIDDEN, c0:c0 + HIDDEN] = W1
        B[5, c0:c0 + HIDDEN] = b1[0]
        # fused head layer 3: each head's rows map to its packed output columns
        o0 = OUT_OFF[hi]
        W[R_W2 + c0:R_W2 + c0 + HIDDEN, o0:o0 + OUT_DIM[hi]] = W2
        B[6, o0:o0 + OUT_DIM[hi]] = b2[0]

    return jnp.asarray(W), jnp.asarray(B)


# ------------------------- pure-JAX reference --------------------------------
def reference_forward(flat_params, x, z, z_):
    p = list(flat_params)
    base = p[0:8]
    mean_p, std_p, wgt_p, cls_p = p[8:15], p[15:22], p[22:29], p[29:36]

    def elu(v):
        return jnp.where(v > 0, v, jnp.exp(jnp.minimum(v, 0.0)) - 1.0)

    h = elu(x @ base[0] + base[1])
    h = elu(h @ base[2] + base[3])
    h = elu(h @ base[4] + base[5])
    h = jnp.tanh(h @ base[6] + base[7])

    def head(h_in, z_in, hp):
        Wh, Wz, b0, W1, b1, W2, b2 = hp
        a = elu(h_in @ Wh + z_in @ Wz + b0)
        a = elu(a @ W1 + b1)
        return a @ W2 + b2

    means = jnp.tanh(head(h, z_, mean_p))
    stds = jnp.maximum(jax.nn.softplus(head(h, z_, std_p)), 1e-5)
    weights = head(h, z_, wgt_p)          # torch module applies no final activation
    logits = head(h, z, cls_p)            # classifier uses z (not z_)
    return means, stds, weights, logits


# ---------------------------------- main --------------------------------------
if __name__ == "__main__":
    key = jax.random.PRNGKey(0)
    kp, kx, kz, kzp = jax.random.split(key, 4)

    flat_params = init_params(kp)
    w_slab, b_slab = pack_params(flat_params)

    x = jax.random.normal(kx, (BATCH, DIM_IN), jnp.float32)
    z = jax.random.normal(kz, (BATCH, Z_DIM), jnp.float32)
    z_ = jax.random.normal(kzp, (BATCH, Z_DIM), jnp.float32)
    # NOTE: the torch forward also takes `e`, which is unused in forward().

    out = mdn_forward(w_slab, b_slab, x, z, z_)
    out = jax.block_until_ready(out)
    means, stds, weights, logits = out

    # sanity check against the pure-JAX reference
    ref = reference_forward(flat_params, x, z, z_)
    for got, want in zip(out, ref):
        np.testing.assert_allclose(np.asarray(got), np.asarray(want),
                                   rtol=1e-5, atol=2e-5)

    assert means.shape == (BATCH, DIM_OUT * N_COMPONENTS)
    assert stds.shape == (BATCH, DIM_OUT * N_COMPONENTS)
    assert weights.shape == (BATCH, N_COMPONENTS)
    assert logits.shape == (BATCH, 1)

    print("KERNEL_OK")
</pallas_src>

<mosaic_0001>
module attributes {stable_mosaic.version = 11 : i64} {
  func.func @mdn_kernel(%arg0: i32, %arg1: memref<8x128xf32, #tpu.memory_space<vmem>>, %arg2: memref<8x8xf32, #tpu.memory_space<vmem>>, %arg3: memref<904x128xf32, #tpu.memory_space<vmem>>, %arg4: memref<8x128xf32, #tpu.memory_space<vmem>>, %arg5: memref<8x128xf32, #tpu.memory_space<vmem>>) attributes {dimension_semantics = [#tpu.dimension_semantics<parallel>], iteration_bounds = array<i64: 1>, scalar_prefetch = 0 : i64, scratch_operands = 0 : i64, tpu.core_type = #tpu.core_type<tc>, window_params = [{transform_indices = @transform_0, window_bounds = array<i64: 8, 128>}, {transform_indices = @transform_1, window_bounds = array<i64: 8, 8>}, {pipeline_mode = #tpu.pipeline_mode<synchronous>, transform_indices = @transform_2, window_bounds = array<i64: 904, 128>}, {pipeline_mode = #tpu.pipeline_mode<synchronous>, transform_indices = @transform_3, window_bounds = array<i64: 8, 128>}, {transform_indices = @transform_4, window_bounds = array<i64: 8, 128>}]} {
    %c0 = arith.constant 0 : index
    %c0_0 = arith.constant 0 : index
    %0 = vector.load %arg1[%c0, %c0_0] : memref<8x128xf32, #tpu.memory_space<vmem>>, vector<8x128xf32>
    %c0_1 = arith.constant 0 : index
    %c0_2 = arith.constant 0 : index
    %1 = vector.load %arg2[%c0_1, %c0_2] : memref<8x8xf32, #tpu.memory_space<vmem>>, vector<8x8xf32>
    %c0_3 = arith.constant 0 : index
    %c0_4 = arith.constant 0 : index
    %2 = vector.load %arg3[%c0_3, %c0_4] : memref<904x128xf32, #tpu.memory_space<vmem>>, vector<128x128xf32>
    %cst = arith.constant dense<0.000000e+00> : vector<8x128xf32>
    %3 = tpu.matmul %0, %2, %cst {dimension_numbers = #tpu.dot_dimension_numbers<[1], [0], [0], [1], [0, 0, 1, 1], [], []>} : vector<8x128xf32>, vector<128x128xf32>, vector<8x128xf32> -> vector<8x128xf32>
    %c0_5 = arith.constant 0 : index
    %c0_6 = arith.constant 0 : index
    %4 = vector.load %arg4[%c0_5, %c0_6] : memref<8x128xf32, #tpu.memory_space<vmem>>, vector<1x128xf32>
    %5 = vector.broadcast %4 : vector<1x128xf32> to vector<8x128xf32>
    %6 = arith.addf %3, %5 : vector<8x128xf32>
    %cst_7 = arith.constant 0.000000e+00 : f32
    %7 = vector.broadcast %cst_7 : f32 to vector<8x128xf32>
    %8 = arith.cmpf ogt, %6, %7 : vector<8x128xf32>
    %cst_8 = arith.constant 0.000000e+00 : f32
    %9 = vector.broadcast %cst_8 : f32 to vector<8x128xf32>
    %10 = arith.minimumf %6, %9 : vector<8x128xf32>
    %11 = math.exp %10 : vector<8x128xf32>
    %cst_9 = arith.constant 1.000000e+00 : f32
    %12 = vector.broadcast %cst_9 : f32 to vector<8x128xf32>
    %13 = arith.subf %11, %12 : vector<8x128xf32>
    %14 = arith.select %8, %6, %13 : vector<8x128xi1>, vector<8x128xf32>
    %c128 = arith.constant 128 : index
    %c0_10 = arith.constant 0 : index
    %15 = vector.load %arg3[%c128, %c0_10] : memref<904x128xf32, #tpu.memory_space<vmem>>, vector<128x128xf32>
    %cst_11 = arith.constant dense<0.000000e+00> : vector<8x128xf32>
    %16 = tpu.matmul %14, %15, %cst_11 {dimension_numbers = #tpu.dot_dimension_numbers<[1], [0], [0], [1], [0, 0, 1, 1], [], []>} : vector<8x128xf32>, vector<128x128xf32>, vector<8x128xf32> -> vector<8x128xf32>
    %c1 = arith.constant 1 : index
    %c0_12 = arith.constant 0 : index
    %17 = vector.load %arg4[%c1, %c0_12] : memref<8x128xf32, #tpu.memory_space<vmem>>, vector<1x128xf32>
    %18 = vector.broadcast %17 : vector<1x128xf32> to vector<8x128xf32>
    %19 = arith.addf %16, %18 : vector<8x128xf32>
    %cst_13 = arith.constant 0.000000e+00 : f32
    %20 = vector.broadcast %cst_13 : f32 to vector<8x128xf32>
    %21 = arith.cmpf ogt, %19, %20 : vector<8x128xf32>
    %cst_14 = arith.constant 0.000000e+00 : f32
    %22 = vector.broadcast %cst_14 : f32 to vector<8x128xf32>
    %23 = arith.minimumf %19, %22 : vector<8x128xf32>
    %24 = math.exp %23 : vector<8x128xf32>
    %cst_15 = arith.constant 1.000000e+00 : f32
    %25 = vector.broadcast %cst_15 : f32 to vector<8x128xf32>
    %26 = arith.subf %24, %25 : vector<8x128xf32>
    %27 = arith.select %21, %19, %26 : vector<8x128xi1>, vector<8x128xf32>
    %c256 = arith.constant 256 : index
    %c0_16 = arith.constant 0 : index
    %28 = vector.load %arg3[%c256, %c0_16] : memref<904x128xf32, #tpu.memory_space<vmem>>, vector<128x128xf32>
    %cst_17 = arith.constant dense<0.000000e+00> : vector<8x128xf32>
    %29 = tpu.matmul %27, %28, %cst_17 {dimension_numbers = #tpu.dot_dimension_numbers<[1], [0], [0], [1], [0, 0, 1, 1], [], []>} : vector<8x128xf32>, vector<128x128xf32>, vector<8x128xf32> -> vector<8x128xf32>
    %c2 = arith.constant 2 : index
    %c0_18 = arith.constant 0 : index
    %30 = vector.load %arg4[%c2, %c0_18] : memref<8x128xf32, #tpu.memory_space<vmem>>, vector<1x128xf32>
    %31 = vector.broadcast %30 : vector<1x128xf32> to vector<8x128xf32>
    %32 = arith.addf %29, %31 : vector<8x128xf32>
    %cst_19 = arith.constant 0.000000e+00 : f32
    %33 = vector.broadcast %cst_19 : f32 to vector<8x128xf32>
    %34 = arith.cmpf ogt, %32, %33 : vector<8x128xf32>
    %cst_20 = arith.constant 0.000000e+00 : f32
    %35 = vector.broadcast %cst_20 : f32 to vector<8x128xf32>
    %36 = arith.minimumf %32, %35 : vector<8x128xf32>
    %37 = math.exp %36 : vector<8x128xf32>
    %cst_21 = arith.constant 1.000000e+00 : f32
    %38 = vector.broadcast %cst_21 : f32 to vector<8x128xf32>
    %39 = arith.subf %37, %38 : vector<8x128xf32>
    %40 = arith.select %34, %32, %39 : vector<8x128xi1>, vector<8x128xf32>
    %c384 = arith.constant 384 : index
    %c0_22 = arith.constant 0 : index
    %41 = vector.load %arg3[%c384, %c0_22] : memref<904x128xf32, #tpu.memory_space<vmem>>, vector<128x128xf32>
    %cst_23 = arith.constant dense<0.000000e+00> : vector<8x128xf32>
    %42 = tpu.matmul %40, %41, %cst_23 {dimension_numbers = #tpu.dot_dimension_numbers<[1], [0], [0], [1], [0, 0, 1, 1], [], []>} : vector<8x128xf32>, vector<128x128xf32>, vector<8x128xf32> -> vector<8x128xf32>
    %c3 = arith.constant 3 : index
    %c0_24 = arith.constant 0 : index
    %43 = vector.load %arg4[%c3, %c0_24] : memref<8x128xf32, #tpu.memory_space<vmem>>, vector<1x128xf32>
    %44 = vector.broadcast %43 : vector<1x128xf32> to vector<8x128xf32>
    %45 = arith.addf %42, %44 : vector<8x128xf32>
    %46 = math.tanh %45 : vector<8x128xf32>
    %c512 = arith.constant 512 : index
    %c0_25 = arith.constant 0 : index
    %47 = vector.load %arg3[%c512, %c0_25] : memref<904x128xf32, #tpu.memory_space<vmem>>, vector<128x128xf32>
    %cst_26 = arith.constant dense<0.000000e+00> : vector<8x128xf32>
    %48 = tpu.matmul %46, %47, %cst_26 {dimension_numbers = #tpu.dot_dimension_numbers<[1], [0], [0], [1], [0, 0, 1, 1], [], []>} : vector<8x128xf32>, vector<128x128xf32>, vector<8x128xf32> -> vector<8x128xf32>
    %c640 = arith.constant 640 : index
    %c0_27 = arith.constant 0 : index
    %49 = vector.load %arg3[%c640, %c0_27] : memref<904x128xf32, #tpu.memory_space<vmem>>, vector<8x128xf32>
    %cst_28 = arith.constant dense<0.000000e+00> : vector<8x128xf32>
    %50 = tpu.matmul %1, %49, %cst_28 {dimension_numbers = #tpu.dot_dimension_numbers<[1], [0], [0], [1], [0, 0, 1, 1], [], []>} : vector<8x8xf32>, vector<8x128xf32>, vector<8x128xf32> -> vector<8x128xf32>
    %51 = arith.addf %48, %50 : vector<8x128xf32>
    %c4 = arith.constant 4 : index
    %c0_29 = arith.constant 0 : index
    %52 = vector.load %arg4[%c4, %c0_29] : memref<8x128xf32, #tpu.memory_space<vmem>>, vector<1x128xf32>
    %53 = vector.broadcast %52 : vector<1x128xf32> to vector<8x128xf32>
    %54 = arith.addf %51, %53 : vector<8x128xf32>
    %cst_30 = arith.constant 0.000000e+00 : f32
    %55 = vector.broadcast %cst_30 : f32 to vector<8x128xf32>
    %56 = arith.cmpf ogt, %54, %55 : vector<8x128xf32>
    %cst_31 = arith.constant 0.000000e+00 : f32
    %57 = vector.broadcast %cst_31 : f32 to vector<8x128xf32>
    %58 = arith.minimumf %54, %57 : vector<8x128xf32>
    %59 = math.exp %58 : vector<8x128xf32>
    %cst_32 = arith.constant 1.000000e+00 : f32
    %60 = vector.broadcast %cst_32 : f32 to vector<8x128xf32>
    %61 = arith.subf %59, %60 : vector<8x128xf32>
    %62 = arith.select %56, %54, %61 : vector<8x128xi1>, vector<8x128xf32>
    %c648 = arith.constant 648 : index
    %c0_33 = arith.constant 0 : index
    %63 = vector.load %arg3[%c648, %c0_33] : memref<904x128xf32, #tpu.memory_space<vmem>>, vector<128x128xf32>
    %cst_34 = arith.constant dense<0.000000e+00> : vector<8x128xf32>
    %64 = tpu.matmul %62, %63, %cst_34 {dimension_numbers = #tpu.dot_dimension_numbers<[1], [0], [0], [1], [0, 0, 1, 1], [], []>} : vector<8x128xf32>, vector<128x128xf32>, vector<8x128xf32> -> vector<8x128xf32>
    %c5 = arith.constant 5 : index
    %c0_35 = arith.constant 0 : index
    %65 = vector.load %arg4[%c5, %c0_35] : memref<8x128xf32, #tpu.memory_space<vmem>>, vector<1x128xf32>
    %66 = vector.broadcast %65 : vector<1x128xf32> to vector<8x128xf32>
    %67 = arith.addf %64, %66 : vector<8x128xf32>
    %cst_36 = arith.constant 0.000000e+00 : f32
    %68 = vector.broadcast %cst_36 : f32 to vector<8x128xf32>
    %69 = arith.cmpf ogt, %67, %68 : vector<8x128xf32>
    %cst_37 = arith.constant 0.000000e+00 : f32
    %70 = vector.broadcast %cst_37 : f32 to vector<8x128xf32>
    %71 = arith.minimumf %67, %70 : vector<8x128xf32>
    %72 = math.exp %71 : vector<8x128xf32>
    %cst_38 = arith.constant 1.000000e+00 : f32
    %73 = vector.broadcast %cst_38 : f32 to vector<8x128xf32>
    %74 = arith.subf %72, %73 : vector<8x128xf32>
    %75 = arith.select %69, %67, %74 : vector<8x128xi1>, vector<8x128xf32>
    %c776 = arith.constant 776 : index
    %c0_39 = arith.constant 0 : index
    %76 = vector.load %arg3[%c776, %c0_39] : memref<904x128xf32, #tpu.memory_space<vmem>>, vector<128x128xf32>
    %cst_40 = arith.constant dense<0.000000e+00> : vector<8x128xf32>
    %77 = tpu.matmul %75, %76, %cst_40 {dimension_numbers = #tpu.dot_dimension_numbers<[1], [0], [0], [1], [0, 0, 1, 1], [], []>} : vector<8x128xf32>, vector<128x128xf32>, vector<8x128xf32> -> vector<8x128xf32>
    %c6 = arith.constant 6 : index
    %c0_41 = arith.constant 0 : index
    %78 = vector.load %arg4[%c6, %c0_41] : memref<8x128xf32, #tpu.memory_space<vmem>>, vector<1x128xf32>
    %79 = vector.broadcast %78 : vector<1x128xf32> to vector<8x128xf32>
    %80 = arith.addf %77, %79 : vector<8x128xf32>
    %81 = tpu.iota {dimensions = array<i32: 1>} : vector<8x128xi32>
    %c20_i32 = arith.constant 20 : i32
    %82 = vector.broadcast %c20_i32 : i32 to vector<8x128xi32>
    %83 = arith.cmpi slt, %81, %82 : vector<8x128xi32>
    %84 = math.tanh %80 : vector<8x128xf32>
    %c40_i32 = arith.constant 40 : i32
    %85 = vector.broadcast %c40_i32 : i32 to vector<8x128xi32>
    %86 = arith.cmpi slt, %81, %85 : vector<8x128xi32>
    %cst_42 = arith.constant 0.000000e+00 : f32
    %87 = vector.broadcast %cst_42 : f32 to vector<8x128xf32>
    %88 = arith.maximumf %80, %87 : vector<8x128xf32>
    %89 = math.absf %80 : vector<8x128xf32>
    %cst_43 = arith.constant 0.000000e+00 : f32
    %90 = vector.broadcast %cst_43 : f32 to vector<8x128xf32>
    %91 = arith.subf %90, %89 : vector<8x128xf32>
    %92 = math.exp %91 : vector<8x128xf32>
    %93 = math.log1p %92 : vector<8x128xf32>
    %94 = arith.addf %88, %93 : vector<8x128xf32>
    %cst_44 = arith.constant 9.99999974E-6 : f32
    %95 = vector.broadcast %cst_44 : f32 to vector<8x128xf32>
    %96 = arith.maximumf %94, %95 : vector<8x128xf32>
    %97 = arith.select %86, %96, %80 : vector<8x128xi1>, vector<8x128xf32>
    %98 = arith.select %83, %84, %97 : vector<8x128xi1>, vector<8x128xf32>
    %c0_45 = arith.constant 0 : index
    %c0_46 = arith.constant 0 : index
    %99 = vector.load %arg5[%c0_45, %c0_46] : memref<8x128xf32, #tpu.memory_space<vmem>>, vector<8x128xf32>
    tpu.vector_store %arg5[%c0_45, %c0_46], %98 {strides = array<i32>} : memref<8x128xf32, #tpu.memory_space<vmem>>, vector<8x128xf32>,
    return
  }
  func.func @transform_0(%arg0: i32) -> (i32, i32) {
    %c0_i32 = arith.constant 0 : i32
    %c0_i32_0 = arith.constant 0 : i32
    return %arg0, %c0_i32 : i32, i32
  }
  func.func @transform_1(%arg0: i32) -> (i32, i32) {
    %c0_i32 = arith.constant 0 : i32
    %c0_i32_0 = arith.constant 0 : i32
    return %arg0, %c0_i32 : i32, i32
  }
  func.func @transform_2(%arg0: i32) -> (i32, i32) {
    %c0_i32 = arith.constant 0 : i32
    %c0_i32_0 = arith.constant 0 : i32
    %c0_i32_1 = arith.constant 0 : i32
    return %c0_i32, %c0_i32_0 : i32, i32
  }
  func.func @transform_3(%arg0: i32) -> (i32, i32) {
    %c0_i32 = arith.constant 0 : i32
    %c0_i32_0 = arith.constant 0 : i32
    %c0_i32_1 = arith.constant 0 : i32
    return %c0_i32, %c0_i32_0 : i32, i32
  }
  func.func @transform_4(%arg0: i32) -> (i32, i32) {
    %c0_i32 = arith.constant 0 : i32
    %c0_i32_0 = arith.constant 0 : i32
    return %arg0, %c0_i32 : i32, i32
  }
}

</mosaic_0001>

<bundles_post_ra>
// kernel: mdn_forward.1
= control target key start
LH: loop header
LB: loop body
LE: loop exit
PB: predicated region body
PF: predicated region fallthrough
CT: control target
= control target key end

     0   :  { %9 = vsyncpa [#allocation3], 0  ;;  %s1406_s15 = smov [#allocation2]   ;;  %s1552_s0 = inlined_call_operand.vmem [shape: f32[8,128], index: 0, kind: input, shape index: {}]   ;;  %s1553_s1 = inlined_call_operand.vmem [shape: f32[8,8], index: 1, kind: input, shape index: {}]   ;;  %s1554_s2 = inlined_call_operand.hbm [shape: f32[904,128], index: 2, kind: input, shape index: {}]   ;;  %s1555_s3 = inlined_call_operand.vmem [shape: f32[8,128], index: 3, kind: input, shape index: {}]   ;;  %s1556_s4 = inlined_call_operand.vmem [shape: f32[8,128], index: 4, kind: output, shape index: {}]  }
   0x1   :  { %s19_s16 = sshll.u32 %s1406_s15, 4  ;;  %s1382_s19 = scalar_lea.hbm %s1554_s2, 14464  ;;  %s20_s16 = int_to_ptr.vmem [resolvable:$true] %s19_s16 }
   0x2   :  { %p1383_p0 = scmp.ne.s32.totalorder %s1554_s2, %s1382_s19  ;;  %p1386_p1 = scmp.lt.u32.totalorder %s1382_s19, %s1554_s2 }
   0x4   :  { %p1388_p2 = pnand %p1386_p1, %p1383_p0 }
   0x6   :  { %1391 = shalt.err (!%p1388_p2)
}
   0x7   :  { %s1392_s24 = scalar_lea.vmem %s20_s16, 14464  ;;  %p1397_p4 = scmp.lt.s32.totalorder %s20_s16, %s20_s16 }
   0x8   :  { %p1393_p3 = scmp.ne.s32.totalorder %s20_s16, %s1392_s24  ;;  %p1398_p5 = scmp.lt.s32.totalorder %s1392_s24, %s1392_s24 }
   0xa   :  { %p1399_p6 = por %p1398_p5, %p1397_p4 }
   0xc   :  { %p1400_p7 = pnand %p1399_p6, %p1393_p3 }
   0xe   :  { %1403 = shalt.err (!%p1400_p7)
}
   0xf   :  { %s1407_s25 = smov 128   ;;  %s1408_s26 = smov 8  }
  0x10   :  { %25 = dma.hbm_to_vmem [thread:$0]  %s1554_s2, 14464, %s20_s16, [#allocation3], %s1407_s25, %s1407_s25, %s1408_s26  }
  0x11   :  { %1404 = dma.done.wait [#allocation3], 14464  }
  0x12   :  { %1405 = vsyncadd [#allocation3], 4294952832  ;;  %v1409_v0 = vmov 0.0|0.0   ;;  %vm1410_vm0 = vmmov 0   ;;  %v1411_v1 = vmov 0.0   ;;  %v33_v2 = vld [vmem:[#allocation2] sm:$0xff] }
  0x13   :  { %1190 = vmatprep.subr.bf16.mxu0 %v1409_v0  ;;  %972 = vmatprep.mubr.msk.f32.mxu0 %vm1410_vm0, %v1411_v1  ;;  %v34_v3 = vld [vmem:[#allocation2 + $0x8] sm:$0xff]  ;;  %v35_v4 = vld [vmem:[#allocation2 + $0x10] sm:$0xff]  ;;  %v36_v6 = vld [vmem:[#allocation2 + $0x18] sm:$0xff]  ;;  %vm433_vm4 = vcmask 64512  }
  0x14   :  { %1214 = vmatprep.subr.bf16.mxu1 %v1409_v0  ;;  %1007 = vmatprep.mubr.msk.f32.mxu1 %vm1410_vm0, %v1411_v1  ;;  %v1191_v5 = vpack.c.bf16 %v34_v3, %v33_v2  ;;  %v1194_v7 = vpack.c.bf16 %v36_v6, %v35_v4  ;;  %v37_v8 = vld [vmem:[#allocation2 + $0x20] sm:$0xff]  ;;  %v38_v9 = vld [vmem:[#allocation2 + $0x28] sm:$0xff]  ;;  %v132_v12 = vld [vmem:[#allocation2 + $0x90] sm:$0xff] }
  0x15   :  { %v130_v10 = vld [vmem:[#allocation2 + $0x80] sm:$0xff]  ;;  %v131_v11 = vld [vmem:[#allocation2 + $0x88] sm:$0xff]  ;;  %v133_v13 = vld [vmem:[#allocation2 + $0x98] sm:$0xff]  ;;  %v1197_v14 = vpack.c.bf16 %v38_v9, %v37_v8 }
  0x16   :  { %1192 = vmatpush3.bf16.msra.mxu0 %v1191_v5  ;;  %v1215_v15 = vpack.c.bf16 %v131_v11, %v130_v10  ;;  %v39_v16 = vld [vmem:[#allocation2 + $0x30] sm:$0xff]  ;;  %v40_v17 = vld [vmem:[#allocation2 + $0x38] sm:$0xff]  ;;  %v1218_v18 = vpack.c.bf16 %v133_v13, %v132_v12  ;;  %v134_v19 = vld [vmem:[#allocation2 + $0xa0] sm:$0xff] }
  0x17   :  { %1193 = vmatprep.subr.bf16.mxu0 %v1409_v0  ;;  %v135_v20 = vld [vmem:[#allocation2 + $0xa8] sm:$0xff]  ;;  %v1200_v21 = vpack.c.bf16 %v40_v17, %v39_v16  ;;  %v41_v22 = vld [vmem:[#allocation2 + $0x40] sm:$0xff]  ;;  %v43_v26 = vld [vmem:[#allocation2 + $0x50] sm:$0xff] }
  0x18   :  { %1216 = vmatpush3.bf16.msra.mxu1 %v1215_v15  ;;  %v42_v23 = vld [vmem:[#allocation2 + $0x48] sm:$0xff]  ;;  %v1221_v24 = vpack.c.bf16 %v135_v20, %v134_v19  ;;  %v44_v27 = vld [vmem:[#allocation2 + $0x58] sm:$0xff]  ;;  %v45_v29 = vld [vmem:[#allocation2 + $0x60] sm:$0xff] }
  0x19   :  { %1217 = vmatprep.subr.bf16.mxu1 %v1409_v0  ;;  %v1203_v25 = vpack.c.bf16 %v42_v23, %v41_v22  ;;  %v1206_v28 = vpack.c.bf16 %v44_v27, %v43_v26  ;;  %v46_v30 = vld [vmem:[#allocation2 + $0x68] sm:$0xff]  ;;  %v47_v32 = vld [vmem:[#allocation2 + $0x70] sm:$0xff]  ;;  %v48_v33 = vld [vmem:[#allocation2 + $0x78] sm:$0xff] }
  0x1a   :  { %1195 = vmatpush3.bf16.msra.mxu0 %v1194_v7  ;;  %v1209_v31 = vpack.c.bf16 %v46_v30, %v45_v29  ;;  %v1212_v34 = vpack.c.bf16 %v48_v33, %v47_v32  ;;  %v31_v35 = vld [vmem:[%s1552_s0] sm:$0xff]  ;;  %v136_v36 = vld [vmem:[#allocation2 + $0xb0] sm:$0xff]  ;;  %v137_v37 = vld [vmem:[#allocation2 + $0xb8] sm:$0xff] }
  0x1b   :  { %1196 = vmatprep.subr.bf16.mxu0 %v1409_v0  ;;  %v1224_v38 = vpack.c.bf16 %v137_v37, %v136_v36  ;;  %v138_v39 = vld [vmem:[#allocation2 + $0xc0] sm:$0xff]  ;;  %v139_v40 = vld [vmem:[#allocation2 + $0xc8] sm:$0xff]  ;;  %v140_v42 = vld [vmem:[#allocation2 + $0xd0] sm:$0xff] }
  0x1c   :  { %1219 = vmatpush3.bf16.msra.mxu1 %v1218_v18  ;;  %v1227_v41 = vpack.c.bf16 %v139_v40, %v138_v39  ;;  %v141_v43 = vld [vmem:[#allocation2 + $0xd8] sm:$0xff]  ;;  %v142_v44 = vld [vmem:[#allocation2 + $0xe0] sm:$0xff]  ;;  %v143_v46 = vld [vmem:[#allocation2 + $0xe8] sm:$0xff] }
  0x1d   :  { %1220 = vmatprep.subr.bf16.mxu1 %v1409_v0  ;;  %v1230_v45 = vpack.c.bf16 %v141_v43, %v140_v42  ;;  %v1233_v47 = vpack.c.bf16 %v143_v46, %v142_v44  ;;  %v144_v48 = vld [vmem:[#allocation2 + $0xf0] sm:$0xff]  ;;  %v145_v49 = vld [vmem:[#allocation2 + $0xf8] sm:$0xff]  ;;  %v227_v51 = vld [vmem:[#allocation2 + $0x100] sm:$0xff] }
  0x1e   :  { %1198 = vmatpush3.bf16.msra.mxu0 %v1197_v14  ;;  %v1236_v50 = vpack.c.bf16 %v145_v49, %v144_v48  ;;  %v228_v52 = vld [vmem:[#allocation2 + $0x108] sm:$0xff]  ;;  %v229_v53 = vld [vmem:[#allocation2 + $0x110] sm:$0xff]  ;;  %v230_v55 = vld [vmem:[#allocation2 + $0x118] sm:$0xff] }
  0x1f   :  { %1199 = vmatprep.subr.bf16.mxu0 %v1409_v0  ;;  %v1239_v54 = vpack.c.bf16 %v228_v52, %v227_v51  ;;  %v1242_v56 = vpack.c.bf16 %v230_v55, %v229_v53  ;;  %v231_v57 = vld [vmem:[#allocation2 + $0x120] sm:$0xff]  ;;  %v232_v58 = vld [vmem:[#allocation2 + $0x128] sm:$0xff]  ;;  %v233_v7 = vld [vmem:[#allocation2 + $0x130] sm:$0xff] }
  0x20   :  { %1222 = vmatpush3.bf16.msra.mxu1 %v1221_v24  ;;  %v1245_v59 = vpack.c.bf16 %v232_v58, %v231_v57  ;;  %v806_v60 = vld [vmem:[%s1555_s3] ss:$0 sm:$0xff]  ;;  %v234_v8 = vld [vmem:[#allocation2 + $0x138] sm:$0xff]  ;;  %v236_v11 = vld [vmem:[#allocation2 + $0x148] sm:$0xff] }
  0x21   :  { %1223 = vmatprep.subr.bf16.mxu1 %v1409_v0  ;;  %v1248_v9 = vpack.c.bf16 %v234_v8, %v233_v7  ;;  %v235_v10 = vld [vmem:[#allocation2 + $0x140] sm:$0xff]  ;;  %v237_v13 = vld [vmem:[#allocation2 + $0x150] sm:$0xff]  ;;  %v238_v14 = vld [vmem:[#allocation2 + $0x158] sm:$0xff] }
  0x22   :  { %1201 = vmatpush3.bf16.msra.mxu0 %v1200_v21  ;;  %v1251_v12 = vpack.c.bf16 %v236_v11, %v235_v10  ;;  %v239_v15 = vld [vmem:[#allocation2 + $0x160] sm:$0xff]  ;;  %v1254_v16 = vpack.c.bf16 %v238_v14, %v237_v13  ;;  %v240_v17 = vld [vmem:[#allocation2 + $0x168] sm:$0xff]  ;;  %v241_v19 = vld [vmem:[#allocation2 + $0x170] sm:$0xff] }
  0x23   :  { %1202 = vmatprep.subr.bf16.mxu0 %v1409_v0  ;;  %v1257_v18 = vpack.c.bf16 %v240_v17, %v239_v15  ;;  %v242_v20 = vld [vmem:[#allocation2 + $0x178] sm:$0xff]  ;;  %v324_v22 = vld [vmem:[#allocation2 + $0x180] sm:$0xff]  ;;  %v325_v23 = vld [vmem:[#allocation2 + $0x188] sm:$0xff] }
  0x24   :  { %1225 = vmatpush3.bf16.msra.mxu1 %v1224_v38  ;;  %v1260_v21 = vpack.c.bf16 %v242_v20, %v241_v19  ;;  %v326_v24 = vld [vmem:[#allocation2 + $0x190] sm:$0xff]  ;;  %v327_v26 = vld [vmem:[#allocation2 + $0x198] sm:$0xff]  ;;  %v329_v29 = vld [vmem:[#allocation2 + $0x1a8] sm:$0xff] }
  0x25   :  { %1226 = vmatprep.subr.bf16.mxu1 %v1409_v0  ;;  %v1266_v27 = vpack.c.bf16 %v327_v26, %v326_v24  ;;  %v330_v40 = vld [vmem:[#allocation2 + $0x1b0] sm:$0xff]  ;;  %v332_v43 = vld [vmem:[#allocation2 + $0x1c0] sm:$0xff]  ;;  %v333_v44 = vld [vmem:[#allocation2 + $0x1c8] sm:$0xff] }
  0x26   :  { %1204 = vmatpush3.bf16.msra.mxu0 %v1203_v25  ;;  %v1263_v25 = vpack.c.bf16 %v325_v23, %v324_v22  ;;  %v334_v46 = vld [vmem:[#allocation2 + $0x1d0] sm:$0xff]  ;;  %v336_v48 = vld [vmem:[#allocation2 + $0x1e0] sm:$0xff]  ;;  %v339_v53 = vld [vmem:[#allocation2 + $0x1f8] sm:$0xff] }
  0x27   :  { %1205 = vmatprep.subr.bf16.mxu0 %v1409_v0  ;;  %v338_v52 = vld [vmem:[#allocation2 + $0x1f0] sm:$0xff]  ;;  %v810_v55 = vld [vmem:[%s1555_s3 + $0x2] ss:$0 sm:$0xff]  ;;  %v425_v15 = vld [vmem:[#allocation2 + $0x248] sm:$0xff] }
  0x28   :  { %1228 = vmatpush3.bf16.msra.mxu1 %v1227_v41  ;;  %v331_v41 = vld [vmem:[#allocation2 + $0x1b8] sm:$0xff]  ;;  %v420_v8 = vld [vmem:[#allocation2 + $0x220] sm:$0xff]  ;;  %v422_v11 = vld [vmem:[#allocation2 + $0x230] sm:$0xff] }
  0x29   :  { %1229 = vmatprep.subr.bf16.mxu1 %v1409_v0  ;;  %v1272_v42 = vpack.c.bf16 %v331_v41, %v330_v40  ;;  %v424_v14 = vld [vmem:[#allocation2 + $0x240] sm:$0xff]  ;;  %v426_v17 = vld [vmem:[#allocation2 + $0x250] sm:$0xff]  ;;  %v593_v41 = vld [vmem:[#allocation2 + $0x2a8] sm:$0xff] }
  0x2a   :  { %1207 = vmatpush3.bf16.msra.mxu0 %v1206_v28  ;;  %v328_v28 = vld [vmem:[#allocation2 + $0x1a0] sm:$0xff]  ;;  %v430_v24 = vld [vmem:[#allocation2 + $0x270] sm:$0xff] }
  0x2b   :  { %1208 = vmatprep.subr.bf16.mxu0 %v1409_v0  ;;  %v1269_v30 = vpack.c.bf16 %v329_v29, %v328_v28  ;;  %v428_v20 = vld [vmem:[#allocation2 + $0x260] sm:$0xff]  ;;  %v589_v28 = vld [vmem:[#allocation2 + $0x288] sm:$0xff]  ;;  %v590_v29 = vld [vmem:[#allocation2 + $0x290] sm:$0xff] }
  0x2c   :  { %1231 = vmatpush3.bf16.msra.mxu1 %v1230_v45  ;;  %v1275_v45 = vpack.c.bf16 %v333_v44, %v332_v43  ;;  %v432_v22 = vld [vmem:[#allocation2 + $0x280] sm:$0xff]  ;;  %v595_v44 = vld [vmem:[#allocation2 + $0x2b8] sm:$0xff] }
  0x2d   :  { %1232 = vmatprep.subr.bf16.mxu1 %v1409_v0  ;;  %v32_v26 = vld [vmem:[%s1553_s1] sm:$0xff] }
  0x2e   :  { %1210 = vmatpush3.bf16.msra.mxu0 %v1209_v31  ;;  %v808_v31 = vld [vmem:[%s1555_s3 + $0x1] ss:$0 sm:$0xff] }
  0x2f   :  { %1211 = vmatprep.subr.bf16.mxu0 %v1409_v0 }
  0x30   :  { %1234 = vmatpush3.bf16.msra.mxu1 %v1233_v47  ;;  %v335_v47 = vld [vmem:[#allocation2 + $0x1d8] sm:$0xff] }
  0x31   :  { %1235 = vmatprep.subr.bf16.mxu1 %v1409_v0  ;;  %v1278_v49 = vpack.c.bf16 %v335_v47, %v334_v46  ;;  %v597_v47 = vld [vmem:[#allocation2 + $0x2c8] sm:$0xff] }
  0x32   :  { %1213 = vmatpush3.bf16.msra.mxu0 %v1212_v34 }
  0x33   :  { %1238 = vmatprep.subr.bf16.mxu0 %v1409_v0 }
  0x34   :  { %1237 = vmatpush3.bf16.msra.mxu1 %v1236_v50  ;;  %v337_v50 = vld [vmem:[#allocation2 + $0x1e8] sm:$0xff] }
  0x35   :  { %973 = vmatmul.mubr.f32.vlgmr.msra.gmra.mrb[0].mxu0 %v31_v35  ;;  %1262 = vmatprep.subr.bf16.mxu1 %v1409_v0  ;;  %v1281_v51 = vpack.c.bf16 %v337_v50, %v336_v48  ;;  %v598_v48 = vld [vmem:[#allocation2 + $0x2d0] sm:$0xff]  ;;  %v600_v50 = vld [vmem:[#allocation2 + $0x2e0] sm:$0xff] }
  0x36   :  { %1042 = vmatprep.mubr.msk.f32.mxu0 %vm1410_vm0, %v1411_v1  ;;  %1240 = vmatpush3.bf16.msra.mxu0 %v1239_v54  ;;  %v1284_v54 = vpack.c.bf16 %v339_v53, %v338_v52  ;;  %v602_v53 = vld [vmem:[#allocation2 + $0x2f0] sm:$0xff] }
  0x37   :  { %1241 = vmatprep.subr.bf16.mxu0 %v1409_v0 }
  0x3a   :  { %1243 = vmatpush3.bf16.msra.mxu0 %v1242_v56 }
  0x3b   :  { %1244 = vmatprep.subr.bf16.mxu0 %v1409_v0 }
  0x3e   :  { %1246 = vmatpush3.bf16.msra.mxu0 %v1245_v59 }
  0x3f   :  { %1247 = vmatprep.subr.bf16.mxu0 %v1409_v0 }
  0x42   :  { %1249 = vmatpush3.bf16.msra.mxu0 %v1248_v9  ;;  %v421_v9 = vld [vmem:[#allocation2 + $0x228] sm:$0xff] }
  0x43   :  { %1250 = vmatprep.subr.bf16.mxu0 %v1409_v0  ;;  %v1293_v10 = vpack.c.bf16 %v421_v9, %v420_v8 }
  0x46   :  { %1252 = vmatpush3.bf16.msra.mxu0 %v1251_v12  ;;  %v423_v12 = vld [vmem:[#allocation2 + $0x238] sm:$0xff] }
  0x47   :  { %1253 = vmatprep.subr.bf16.mxu0 %v1409_v0  ;;  %v1296_v13 = vpack.c.bf16 %v423_v12, %v422_v11 }
  0x4a   :  { %1255 = vmatpush3.bf16.msra.mxu0 %v1254_v16  ;;  %v1299_v16 = vpack.c.bf16 %v425_v15, %v424_v14  ;;  %v692_v15 = vld [vmem:[#allocation2 + $0x338] sm:$0xff] }
  0x4b   :  { %1256 = vmatprep.subr.bf16.mxu0 %v1409_v0 }
  0x4e   :  { %1258 = vmatpush3.bf16.msra.mxu0 %v1257_v18  ;;  %v427_v18 = vld [vmem:[#allocation2 + $0x258] sm:$0xff] }
  0x4f   :  { %1259 = vmatprep.subr.bf16.mxu0 %v1409_v0  ;;  %v1302_v19 = vpack.c.bf16 %v427_v18, %v426_v17  ;;  %v694_v18 = vld [vmem:[#allocation2 + $0x348] sm:$0xff] }
  0x52   :  { %1261 = vmatpush3.bf16.msra.mxu0 %v1260_v21  ;;  %v429_v21 = vld [vmem:[#allocation2 + $0x268] sm:$0xff] }
  0x53   :  { %1080 = vmatprep.subr.mxu0 %v1411_v1  ;;  %v1305_v23 = vpack.c.bf16 %v429_v21, %v428_v20  ;;  %v696_v21 = vld [vmem:[#allocation2 + $0x358] sm:$0xff] }
 0x108   :  { %v120_v61 = vpop.f32.mrb[0].mxu0 }
 0x109   :  { %v121_v62 = vadd.f32 %v806_v60, %v120_v61  ;;  %v974_v63 = vpop.f32.mrb[1].mxu0  ;;  %v416_v61 = vld [vmem:[#allocation2 + $0x200] sm:$0xff] }
 0x10b   :  { %v125_v2 = vmin.f32 %v121_v62, 0.0  ;;  %vm124_vm1 = vcmp.gt.f32.partialorder %v121_v62, 0.0 }
 0x10d   :  { %v126_v3 = vmul.f32 1.442695, %v125_v2 }
 0x10f   :  { %1364 = vpow2.f32 %v126_v3 }
 0x119   :  { %v1365_v4 = vpop.eup %1364 }
 0x11a   :  { %v807_v5 = vadd.f32 -1.0, %v1365_v4  ;;  %v418_v4 = vld [vmem:[#allocation2 + $0x210] sm:$0xff] }
 0x11c   :  { %v129_v6 = vsel %vm124_vm1, %v121_v62, %v807_v5  ;;  %v417_v62 = vld [vmem:[#allocation2 + $0x208] sm:$0xff]  ;;  %v419_v5 = vld [vmem:[#allocation2 + $0x218] sm:$0xff] }
 0x11d   :  { %1008 = vmatmul.mubr.f32.vlgmr.msra.gmra.mrb[0].mxu1 %v129_v6  ;;  %v1287_v3 = vpack.c.bf16 %v417_v62, %v416_v61  ;;  %v1290_v7 = vpack.c.bf16 %v419_v5, %v418_v4  ;;  %v689_v62 = vld [vmem:[#allocation2 + $0x320] sm:$0xff] }
 0x11e   :  { %1077 = vmatprep.mubr.msk.f32.mxu1 %vm1410_vm0, %v1411_v1  ;;  %1264 = vmatpush3.bf16.msra.mxu1 %v1263_v25  ;;  %v431_v25 = vld [vmem:[#allocation2 + $0x278] sm:$0xff] }
 0x11f   :  { %1265 = vmatprep.subr.bf16.mxu1 %v1409_v0 }
 0x122   :  { %1267 = vmatpush3.bf16.msra.mxu1 %v1266_v27  ;;  %v1308_v27 = vpack.c.bf16 %v431_v25, %v430_v24  ;;  %v699_v25 = vld [vmem:[#allocation2 + $0x370] sm:$0xff] }
 0x123   :  { %1268 = vmatprep.subr.bf16.mxu1 %v1409_v0 }
 0x126   :  { %1270 = vmatpush3.bf16.msra.mxu1 %v1269_v30  ;;  %v591_v30 = vld [vmem:[#allocation2 + $0x298] sm:$0xff] }
 0x127   :  { %1271 = vmatprep.subr.bf16.mxu1 %v1409_v0 }
 0x12a   :  { %1273 = vmatpush3.bf16.msra.mxu1 %v1272_v42  ;;  %v594_v42 = vld [vmem:[#allocation2 + $0x2b0] sm:$0xff] }
 0x12b   :  { %1274 = vmatprep.subr.bf16.mxu1 %v1409_v0  ;;  %v1317_v43 = vpack.c.bf16 %v594_v42, %v593_v41 }
 0x12e   :  { %1276 = vmatpush3.bf16.msra.mxu1 %v1275_v45  ;;  %v596_v45 = vld [vmem:[#allocation2 + $0x2c0] sm:$0xff] }
 0x12f   :  { %1277 = vmatprep.subr.bf16.mxu1 %v1409_v0  ;;  %v1320_v46 = vpack.c.bf16 %v596_v45, %v595_v44 }
 0x132   :  { %1279 = vmatpush3.bf16.msra.mxu1 %v1278_v49  ;;  %v1323_v49 = vpack.c.bf16 %v598_v48, %v597_v47  ;;  %v777_v48 = vlaneseq }
 0x133   :  { %1280 = vmatprep.subr.bf16.mxu1 %v1409_v0 }
 0x136   :  { %1282 = vmatpush3.bf16.msra.mxu1 %v1281_v51  ;;  %v601_v51 = vld [vmem:[#allocation2 + $0x2e8] sm:$0xff] }
 0x137   :  { %1283 = vmatprep.subr.bf16.mxu1 %v1409_v0 }
 0x13a   :  { %1285 = vmatpush3.bf16.msra.mxu1 %v1284_v54  ;;  %v1329_v54 = vpack.c.bf16 %v602_v53, %v601_v51  ;;  %v778_v51 = vand.u32 127, %v777_v48 }
 0x13b   :  { %1286 = vmatprep.subr.bf16.mxu1 %v1409_v0 }
 0x13c   :  { %vm781_vm8 = vcmp.lt.s32.totalorder %v778_v51, 40  ;;  %vm779_vm9 = vcmp.lt.s32.totalorder %v778_v51, 20 }
 0x1f0   :  { %v217_v32 = vpop.f32.mrb[0].mxu1 }
 0x1f1   :  { %v218_v33 = vadd.f32 %v808_v31, %v217_v32  ;;  %v1009_v34 = vpop.f32.mrb[1].mxu1  ;;  %v1311_v31 = vpack.c.bf16 %v590_v29, %v589_v28  ;;  %v592_v32 = vld [vmem:[#allocation2 + $0x2a0] sm:$0xff] }
 0x1f2   :  { %v812_v34 = vld [vmem:[%s1555_s3 + $0x3] ss:$0 sm:$0xff] }
 0x1f3   :  { %v222_v35 = vmin.f32 %v218_v33, 0.0  ;;  %vm221_vm2 = vcmp.gt.f32.partialorder %v218_v33, 0.0  ;;  %v701_v28 = vld [vmem:[#allocation2 + $0x380] sm:$0xff] }
 0x1f5   :  { %v223_v36 = vmul.f32 1.442695, %v222_v35 }
 0x1f7   :  { %1366 = vpow2.f32 %v223_v36 }
 0x201   :  { %v1367_v37 = vpop.eup %1366 }
 0x202   :  { %v809_v38 = vadd.f32 -1.0, %v1367_v37 }
 0x204   :  { %v226_v39 = vsel %vm221_vm2, %v218_v33, %v809_v38  ;;  %v1314_v33 = vpack.c.bf16 %v592_v32, %v591_v30  ;;  %v816_v30 = vld [vmem:[%s1555_s3 + $0x5] ss:$0 sm:$0xff] }
 0x205   :  { %1043 = vmatmul.mubr.f32.vlgmr.msra.gmra.mrb[2].mxu0 %v226_v39 }
 0x206   :  { %1082 = vmatprep.mubr.msk.f32.mxu0 %vm1410_vm0, %v1411_v1  ;;  %1081 = vmatpush3.msra.mxu0 %v432_v22  ;;  %v697_v22 = vld [vmem:[#allocation2 + $0x360] sm:$0xff] }
 0x207   :  { %1310 = vmatprep.subr.bf16.mxu0 %v1409_v0  ;;  %v1350_v24 = vpack.c.bf16 %v697_v22, %v696_v21 }
 0x209   :  { %1083 = vmatmul.mubr.msk.f32.vlgmr.msra.gmra.mrb[4].mxu0 %vm433_vm4, %v32_v26 }
 0x20a   :  { %1152 = vmatprep.mubr.msk.f32.mxu0 %vm1410_vm0, %v1411_v1  ;;  %1312 = vmatpush3.bf16.msra.mxu0 %v1311_v31 }
 0x20b   :  { %1313 = vmatprep.subr.bf16.mxu0 %v1409_v0 }
 0x20e   :  { %1315 = vmatpush3.bf16.msra.mxu0 %v1314_v33 }
 0x20f   :  { %1316 = vmatprep.subr.bf16.mxu0 %v1409_v0 }
 0x212   :  { %1318 = vmatpush3.bf16.msra.mxu0 %v1317_v43 }
 0x213   :  { %1319 = vmatprep.subr.bf16.mxu0 %v1409_v0 }
 0x216   :  { %1321 = vmatpush3.bf16.msra.mxu0 %v1320_v46 }
 0x217   :  { %1322 = vmatprep.subr.bf16.mxu0 %v1409_v0 }
 0x21a   :  { %1324 = vmatpush3.bf16.msra.mxu0 %v1323_v49 }
 0x21b   :  { %1325 = vmatprep.subr.bf16.mxu0 %v1409_v0 }
 0x2d8   :  { %v314_v56 = vpop.f32.mrb[2].mxu0 }
 0x2d9   :  { %v315_v57 = vadd.f32 %v810_v55, %v314_v56  ;;  %v1044_v58 = vpop.f32.mrb[3].mxu0  ;;  %v603_v55 = vld [vmem:[#allocation2 + $0x2f8] sm:$0xff]  ;;  %v604_v56 = vld [vmem:[#allocation2 + $0x300] sm:$0xff] }
 0x2da   :  { %v686_v58 = vld [vmem:[#allocation2 + $0x308] sm:$0xff] }
 0x2db   :  { %v319_v59 = vmin.f32 %v315_v57, 0.0  ;;  %vm318_vm3 = vcmp.gt.f32.partialorder %v315_v57, 0.0 }
 0x2dc   :  { %v503_v39 = vpop.f32.mrb[4].mxu0 }
 0x2dd   :  { %v320_v60 = vmul.f32 1.442695, %v319_v59  ;;  %v1084_v40 = vpop.f32.mrb[5].mxu0  ;;  %v687_v59 = vld [vmem:[#allocation2 + $0x310] sm:$0xff] }
 0x2de   :  { %v1335_v61 = vpack.c.bf16 %v687_v59, %v686_v58 }
 0x2df   :  { %1368 = vpow2.f32 %v320_v60  ;;  %v688_v60 = vld [vmem:[#allocation2 + $0x318] sm:$0xff] }
 0x2e9   :  { %v1369_v63 = vpop.eup %1368 }
 0x2ea   :  { %v811_v2 = vadd.f32 -1.0, %v1369_v63  ;;  %v1338_v63 = vpack.c.bf16 %v689_v62, %v688_v60 }
 0x2ec   :  { %v323_v6 = vsel %vm318_vm3, %v315_v57, %v811_v2  ;;  %v1332_v57 = vpack.c.bf16 %v604_v56, %v603_v55  ;;  %v690_v2 = vld [vmem:[#allocation2 + $0x328] sm:$0xff] }
 0x2ed   :  { %1078 = vmatmul.mubr.f32.vlgmr.msra.gmra.mrb[2].mxu1 %v323_v6  ;;  %v814_v6 = vld [vmem:[%s1555_s3 + $0x4] ss:$0 sm:$0xff] }
 0x2ee   :  { %1288 = vmatpush3.bf16.msra.mxu1 %v1287_v3  ;;  %1117 = vmatprep.mubr.msk.f32.mxu1 %vm1410_vm0, %v1411_v1  ;;  %v691_v3 = vld [vmem:[#allocation2 + $0x330] sm:$0xff] }
 0x2ef   :  { %1289 = vmatprep.subr.bf16.mxu1 %v1409_v0  ;;  %v1341_v4 = vpack.c.bf16 %v691_v3, %v690_v2 }
 0x2f2   :  { %1291 = vmatpush3.bf16.msra.mxu1 %v1290_v7 }
 0x2f3   :  { %1292 = vmatprep.subr.bf16.mxu1 %v1409_v0 }
 0x2f6   :  { %1294 = vmatpush3.bf16.msra.mxu1 %v1293_v10 }
 0x2f7   :  { %1295 = vmatprep.subr.bf16.mxu1 %v1409_v0 }
 0x2fa   :  { %1297 = vmatpush3.bf16.msra.mxu1 %v1296_v13 }
 0x2fb   :  { %1298 = vmatprep.subr.bf16.mxu1 %v1409_v0 }
 0x2fe   :  { %1300 = vmatpush3.bf16.msra.mxu1 %v1299_v16  ;;  %v693_v16 = vld [vmem:[#allocation2 + $0x340] sm:$0xff] }
 0x2ff   :  { %1301 = vmatprep.subr.bf16.mxu1 %v1409_v0  ;;  %v1344_v17 = vpack.c.bf16 %v693_v16, %v692_v15 }
 0x302   :  { %1303 = vmatpush3.bf16.msra.mxu1 %v1302_v19  ;;  %v695_v19 = vld [vmem:[#allocation2 + $0x350] sm:$0xff] }
 0x303   :  { %1304 = vmatprep.subr.bf16.mxu1 %v1409_v0  ;;  %v1347_v20 = vpack.c.bf16 %v695_v19, %v694_v18 }
 0x306   :  { %1306 = vmatpush3.bf16.msra.mxu1 %v1305_v23  ;;  %v698_v23 = vld [vmem:[#allocation2 + $0x368] sm:$0xff] }
 0x307   :  { %1307 = vmatprep.subr.bf16.mxu1 %v1409_v0  ;;  %v1353_v26 = vpack.c.bf16 %v699_v25, %v698_v23 }
 0x30a   :  { %1309 = vmatpush3.bf16.msra.mxu1 %v1308_v27  ;;  %v700_v27 = vld [vmem:[#allocation2 + $0x378] sm:$0xff] }
 0x30b   :  { %1334 = vmatprep.subr.bf16.mxu1 %v1409_v0  ;;  %v1356_v29 = vpack.c.bf16 %v701_v28, %v700_v27 }
 0x3c0   :  { %v411_v35 = vpop.f32.mrb[2].mxu1 }
 0x3c1   :  { %v412_v36 = vadd.f32 %v812_v34, %v411_v35  ;;  %v1079_v37 = vpop.f32.mrb[3].mxu1 }
 0x3c3   :  { %1370 = vtanh.f32 %v412_v36 }
 0x3cd   :  { %v1371_v38 = vpop.eup %1370 }
 0x3ce   :  { %1118 = vmatmul.mubr.f32.vlgmr.msra.gmra.mrb[4].mxu1 %v1371_v38 }
 0x3cf   :  { %1187 = vmatprep.mubr.msk.f32.mxu1 %vm1410_vm0, %v1411_v1  ;;  %v599_v1 = vld [vmem:[#allocation2 + $0x2d8] sm:$0xff]  ;;  %1336 = vmatpush3.bf16.msra.mxu1 %v1335_v61 }
 0x3d0   :  { %v1326_v52 = vpack.c.bf16 %v600_v50, %v599_v1  ;;  %1337 = vmatprep.subr.bf16.mxu1 %v1409_v0 }
 0x3d2   :  { %1327 = vmatpush3.bf16.msra.mxu0 %v1326_v52 }
 0x3d3   :  { %1328 = vmatprep.subr.bf16.mxu0 %v1409_v0  ;;  %1339 = vmatpush3.bf16.msra.mxu1 %v1338_v63 }
 0x3d4   :  { %1340 = vmatprep.subr.bf16.mxu1 %v1409_v0 }
 0x3d6   :  { %1330 = vmatpush3.bf16.msra.mxu0 %v1329_v54 }
 0x3d7   :  { %1331 = vmatprep.subr.bf16.mxu0 %v1409_v0  ;;  %1342 = vmatpush3.bf16.msra.mxu1 %v1341_v4 }
 0x3d8   :  { %1343 = vmatprep.subr.bf16.mxu1 %v1409_v0 }
 0x3da   :  { %1333 = vmatpush3.bf16.msra.mxu0 %v1332_v57 }
 0x3db   :  { %1345 = vmatpush3.bf16.msra.mxu1 %v1344_v17 }
 0x3dc   :  { %1346 = vmatprep.subr.bf16.mxu1 %v1409_v0 }
 0x3df   :  { %1348 = vmatpush3.bf16.msra.mxu1 %v1347_v20 }
 0x3e0   :  { %1349 = vmatprep.subr.bf16.mxu1 %v1409_v0 }
 0x3e3   :  { %1351 = vmatpush3.bf16.msra.mxu1 %v1350_v24 }
 0x3e4   :  { %1352 = vmatprep.subr.bf16.mxu1 %v1409_v0 }
 0x3e7   :  { %1354 = vmatpush3.bf16.msra.mxu1 %v1353_v26 }
 0x3e8   :  { %1355 = vmatprep.subr.bf16.mxu1 %v1409_v0  ;;  %v818_v0 = vld [vmem:[%s1555_s3 + $0x6] ss:$0 sm:$0xff] }
 0x3eb   :  { %1357 = vmatpush3.bf16.msra.mxu1 %v1356_v29 }
 0x4a1   :  { %v573_v5 = vpop.f32.mrb[4].mxu1 }
 0x4a2   :  { %v574_v7 = vadd.f32 %v573_v5, %v503_v39  ;;  %v1119_v8 = vpop.f32.mrb[5].mxu1 }
 0x4a4   :  { %v582_v9 = vadd.f32 %v814_v6, %v574_v7 }
 0x4a6   :  { %v584_v10 = vmin.f32 %v582_v9, 0.0  ;;  %vm583_vm5 = vcmp.gt.f32.partialorder %v582_v9, 0.0 }
 0x4a8   :  { %v585_v11 = vmul.f32 1.442695, %v584_v10 }
 0x4aa   :  { %1372 = vpow2.f32 %v585_v11 }
 0x4b4   :  { %v1373_v12 = vpop.eup %1372 }
 0x4b5   :  { %v815_v13 = vadd.f32 -1.0, %v1373_v12 }
 0x4b7   :  { %v588_v14 = vsel %vm583_vm5, %v582_v9, %v815_v13 }
 0x4b8   :  { %1153 = vmatmul.mubr.f32.vlgmr.msra.gmra.mrb[6].mxu0 %v588_v14 }
 0x58b   :  { %v676_v31 = vpop.f32.mrb[6].mxu0 }
 0x58c   :  { %v677_v32 = vadd.f32 %v816_v30, %v676_v31  ;;  %v1154_v33 = vpop.f32.mrb[7].mxu0 }
 0x58e   :  { %v681_v34 = vmin.f32 %v677_v32, 0.0  ;;  %vm680_vm6 = vcmp.gt.f32.partialorder %v677_v32, 0.0 }
 0x590   :  { %v682_v35 = vmul.f32 1.442695, %v681_v34 }
 0x592   :  { %1374 = vpow2.f32 %v682_v35 }
 0x59c   :  { %v1375_v36 = vpop.eup %1374 }
 0x59d   :  { %v817_v37 = vadd.f32 -1.0, %v1375_v36 }
 0x59f   :  { %v685_v38 = vsel %vm680_vm6, %v677_v32, %v817_v37 }
 0x5a0   :  { %1188 = vmatmul.mubr.f32.vlgmr.msra.gmra.mrb[6].mxu1 %v685_v38 }
 0x673   :  { %v773_v39 = vpop.f32.mrb[6].mxu1 }
 0x674   :  { %v774_v40 = vadd.f32 %v818_v0, %v773_v39  ;;  %v1189_v41 = vpop.f32.mrb[7].mxu1 }
 0x676   :  { %v783_v42 = vand.u32 2147483647, %v774_v40  ;;  %v782_v54 = vmax.f32 %v774_v40, 0.0 }
 0x678   :  { %v784_v43 = vsub.f32 0.0, %v783_v42 }
 0x67a   :  { %v785_v44 = vmul.f32 1.442695, %v784_v43 }
 0x67c   :  { %1376 = vpow2.f32 %v785_v44 }
 0x686   :  { %v1377_v45 = vpop.eup %1376 }
 0x687   :  { %v787_v46 = vadd.f32 1.0, %v1377_v45  ;;  %v790_v47 = vmul.f32 -0.5, %v1377_v45  ;;  %v793_v1 = vand.u32 2147483647, %v1377_v45 }
 0x689   :  { %1378 = vlog2.f32 %v787_v46  ;;  %v791_v49 = vadd.f32 1.0, %v790_v47  ;;  %vm794_vm7 = vcmp.lt.f32.partialorder %v793_v1, 0.0004427343 }
 0x68a   :  { %1380 = vtanh.f32 %v774_v40 }
 0x68b   :  { %v792_v53 = vmul.f32 %v1377_v45, %v791_v49 }
 0x693   :  { %v1379_v50 = vpop.eup %1378 }
 0x694   :  { %v789_v52 = vmul.f32 0.6931472, %v1379_v50  ;;  %v1381_v58 = vpop.eup %1380 }
 0x696   :  { %v795_v55 = vsel %vm794_vm7, %v792_v53, %v789_v52 }
 0x697   :  { %v796_v56 = vadd.f32 %v795_v55, %v782_v54 }
 0x699   :  { %v797_v57 = vmax.f32 %v796_v56, 1e-05 }
 0x69b   :  { %v798_v59 = vsel %vm781_vm8, %v797_v57, %v774_v40 }
 0x69c   :  { %v799_v60 = vsel %vm779_vm9, %v1381_v58, %v798_v59 }
 0x69d   :  { %800 = vst [vmem:[%s1556_s4] sm:$0xff] %v799_v60 }
 0x69e   :  { %805 = vsyncpa [#allocation3], 1 }

</bundles_post_ra>
